<compile_context>
chip_gen: v7x
topology: tpu7x:2x2x1
jax: 0.10.0
libtpu: 0.0.40
codegen_flags: <defaults>
</compile_context>

<pallas_src>
import functools

import jax
import jax.numpy as jnp
from jax.experimental import pallas as pl
from jax.experimental.pallas import tpu as pltpu

_LANES = 128
_SUBLANES = 8
# Tile sizes (rows of the lane-dense slab).  Multiples of 16 so bf16 inputs
# stay layout-legal.  VMEM (double-buffered):
#   unmasked: 2 streams x 2 bufs x 2 MiB = 8 MiB   (4096 rows)
#   masked:   3 streams x 2 bufs x 1 MiB = 6 MiB   (2048 rows)
_MAX_TILE_ROWS_2STREAM = 4096
_MAX_TILE_ROWS_3STREAM = 2048
# Below this element count kernel-launch / single-DMA fixed cost dominates and
# XLA's fused reduction is faster.
_MIN_PALLAS_ELEMS = 65536


def _round_up(x, m):
    return -(-x // m) * m


def _l2_kernel(pred_ref, label_ref, out_ref, *, valid_rows, tile_rows):
    pid = pl.program_id(0)
    d = pred_ref[...].astype(jnp.float32) - label_ref[...].astype(jnp.float32)
    contrib = d * d
    # Ragged last block: rows at or past `valid_rows` contain garbage (Pallas
    # does not zero OOB block regions) -> select them to exactly 0.
    row_id = jax.lax.broadcasted_iota(jnp.int32, (tile_rows, _LANES), 0)
    contrib = jnp.where(row_id < (valid_rows - pid * tile_rows), contrib, 0.0)
    # Per-block (8, 128) partial sum: pure VPU vreg adds, no per-step XLU
    # cross-lane reduce and no scalar round-trip.
    out_ref[...] = contrib.reshape(tile_rows // _SUBLANES, _SUBLANES, _LANES).sum(axis=0)


def _l2_masked_kernel(pred_ref, label_ref, mask_ref, out_ref, *, valid_rows, tile_rows):
    pid = pl.program_id(0)
    d = pred_ref[...].astype(jnp.float32) - label_ref[...].astype(jnp.float32)
    contrib = d * d * mask_ref[...].astype(jnp.float32)
    row_id = jax.lax.broadcasted_iota(jnp.int32, (tile_rows, _LANES), 0)
    contrib = jnp.where(row_id < (valid_rows - pid * tile_rows), contrib, 0.0)
    out_ref[...] = contrib.reshape(tile_rows // _SUBLANES, _SUBLANES, _LANES).sum(axis=0)


def _l2_loss_ref(pred, label, mask=None):
    """Pure-JAX reference mirroring the PyTorch module."""
    losses = (pred.astype(jnp.float32) - label.astype(jnp.float32)) ** 2
    if mask is not None:
        losses = losses * mask.astype(jnp.float32)[:, :, None]
    return jnp.mean(jnp.sum(losses, axis=(1, 2)), axis=0)


def _to_slab(x, padded_total, rows_arr):
    """Lane-dense (rows_arr, 128) view of x's flat data, zero-padded tail."""
    flat = jnp.reshape(x, (-1,))
    if padded_total > flat.shape[0]:
        flat = jnp.pad(flat, (0, padded_total - flat.shape[0]))
    return flat.reshape(rows_arr, _LANES)


def l2_loss(pred, label, mask=None, *, use_pallas=None):
    """Pallas implementation of L2Loss.forward.

    pred, label: [N, K, 2]; mask: [N, K] or None.  Returns a float32 scalar.
    """
    N, K, C = pred.shape
    assert label.shape == (N, K, C)
    if mask is not None:
        assert mask.shape == (N, K)
        if mask.dtype == jnp.bool_:
            mask = mask.astype(jnp.float32)
    total = N * K * C

    if use_pallas is None:
        use_pallas = total >= _MIN_PALLAS_ELEMS
    if not use_pallas:
        return _l2_loss_ref(pred, label, mask)

    max_tile = _MAX_TILE_ROWS_2STREAM if mask is None else _MAX_TILE_ROWS_3STREAM
    rows = pl.cdiv(total, _LANES)                 # data-bearing rows of the slab
    if rows <= max_tile:
        # Single block whose shape equals the (slightly row-padded) array.
        rows_arr = _round_up(rows, _SUBLANES)
        tile_rows = rows_arr
        n_blocks = 1
    else:
        # Multi-block: pad only to a 128-multiple; ragged last block in-kernel.
        rows_arr = rows
        tile_rows = max_tile
        n_blocks = pl.cdiv(rows, tile_rows)
    padded_total = rows_arr * _LANES

    args = [_to_slab(pred, padded_total, rows_arr),
            _to_slab(label, padded_total, rows_arr)]
    row_spec = pl.BlockSpec((tile_rows, _LANES), lambda i: (i, 0))
    in_specs = [row_spec, row_spec]

    if mask is None:
        kernel = functools.partial(_l2_kernel, valid_rows=rows, tile_rows=tile_rows)
    else:
        # Mask kept in its native dtype; f32 cast happens in-kernel.
        mask_bc = jnp.broadcast_to(mask[:, :, None], (N, K, C))
        args.append(_to_slab(mask_bc, padded_total, rows_arr))
        in_specs.append(row_spec)
        kernel = functools.partial(_l2_masked_kernel, valid_rows=rows, tile_rows=tile_rows)

    partials = pl.pallas_call(
        kernel,
        out_shape=jax.ShapeDtypeStruct((n_blocks * _SUBLANES, _LANES), jnp.float32),
        grid=(n_blocks,),
        in_specs=in_specs,
        out_specs=pl.BlockSpec((_SUBLANES, _LANES), lambda i: (i, 0)),
        compiler_params=pltpu.CompilerParams(
            dimension_semantics=("parallel",)),
    )(*args)
    # Tiny final reduction + mean-over-N scaling in the wrapper.
    return jnp.sum(partials) * jnp.float32(1.0 / N)


def _check(got, want, rtol, atol, tag):
    got = jax.block_until_ready(got)
    assert jnp.allclose(got, want, rtol=rtol, atol=atol), (tag, got, want)


if __name__ == "__main__":
    key = jax.random.PRNGKey(0)

    # --- tiny test at the module's natural small shapes (N=2, K=8) ---------
    k1, k2, k3 = jax.random.split(key, 3)
    N, K = 2, 8
    pred = jax.random.normal(k1, (N, K, 2), dtype=jnp.float32)
    label = jax.random.normal(k2, (N, K, 2), dtype=jnp.float32)
    mask = (jax.random.uniform(k3, (N, K)) > 0.3).astype(jnp.float32)

    # auto path (pure-JAX dispatch for tiny inputs)
    _check(l2_loss(pred, label, mask), _l2_loss_ref(pred, label, mask), 1e-5, 1e-5, "tiny-auto-m")
    _check(l2_loss(pred, label, None), _l2_loss_ref(pred, label, None), 1e-5, 1e-5, "tiny-auto")
    # forced Pallas kernel at the same small shape (single (8,128) block)
    _check(l2_loss(pred, label, mask, use_pallas=True),
           _l2_loss_ref(pred, label, mask), 1e-5, 1e-5, "tiny-kernel-m")
    _check(l2_loss(pred, label, None, use_pallas=True),
           _l2_loss_ref(pred, label, None), 1e-5, 1e-5, "tiny-kernel")

    # --- medium test: total % 128 != 0 (exercises the <=127-elem pad path) --
    k4, k5, k6 = jax.random.split(jax.random.PRNGKey(1), 3)
    Nm, Km = 135, 255                              # 68850 elems, single block
    pred_m = jax.random.normal(k4, (Nm, Km, 2), dtype=jnp.float32)
    label_m = jax.random.normal(k5, (Nm, Km, 2), dtype=jnp.float32)
    mask_m = (jax.random.uniform(k6, (Nm, Km)) > 0.3).astype(jnp.float32)
    _check(l2_loss(pred_m, label_m, mask_m),
           _l2_loss_ref(pred_m, label_m, mask_m), 3e-4, 1e-2, "medium-m")

    # --- large test: multi-block grid with ragged last block ----------------
    k7, k8, k9 = jax.random.split(jax.random.PRNGKey(2), 3)
    Nb, Kb = 1100, 256                             # 563200 elems -> 4400 rows
    pred_b = jax.random.normal(k7, (Nb, Kb, 2), dtype=jnp.float32)
    label_b = jax.random.normal(k8, (Nb, Kb, 2), dtype=jnp.float32)
    mask_b = (jax.random.uniform(k9, (Nb, Kb)) > 0.3).astype(jnp.float32)
    _check(l2_loss(pred_b, label_b, mask_b),
           _l2_loss_ref(pred_b, label_b, mask_b), 5e-4, 1e-2, "large-m")
    _check(l2_loss(pred_b, label_b, None),
           _l2_loss_ref(pred_b, label_b, None), 5e-4, 1e-2, "large")

    print("KERNEL_OK")
</pallas_src>

<mosaic_0001>
module attributes {stable_mosaic.version = 11 : i64} {
  func.func @_l2_masked_kernel(%arg0: i32, %arg1: memref<8x128xf32, #tpu.memory_space<vmem>>, %arg2: memref<8x128xf32, #tpu.memory_space<vmem>>, %arg3: memref<8x128xf32, #tpu.memory_space<vmem>>, %arg4: memref<8x128xf32, #tpu.memory_space<vmem>>) attributes {dimension_semantics = [#tpu.dimension_semantics<parallel>], iteration_bounds = array<i64: 1>, scalar_prefetch = 0 : i64, scratch_operands = 0 : i64, tpu.core_type = #tpu.core_type<tc>, window_params = [{transform_indices = @transform_0, window_bounds = array<i64: 8, 128>}, {transform_indices = @transform_1, window_bounds = array<i64: 8, 128>}, {transform_indices = @transform_2, window_bounds = array<i64: 8, 128>}, {transform_indices = @transform_3, window_bounds = array<i64: 8, 128>}]} {
    %c0 = arith.constant 0 : index
    %c0_0 = arith.constant 0 : index
    %0 = vector.load %arg1[%c0, %c0_0] : memref<8x128xf32, #tpu.memory_space<vmem>>, vector<8x128xf32>
    %c0_1 = arith.constant 0 : index
    %c0_2 = arith.constant 0 : index
    %1 = vector.load %arg2[%c0_1, %c0_2] : memref<8x128xf32, #tpu.memory_space<vmem>>, vector<8x128xf32>
    %2 = arith.subf %0, %1 : vector<8x128xf32>
    %3 = arith.mulf %2, %2 : vector<8x128xf32>
    %c0_3 = arith.constant 0 : index
    %c0_4 = arith.constant 0 : index
    %4 = vector.load %arg3[%c0_3, %c0_4] : memref<8x128xf32, #tpu.memory_space<vmem>>, vector<8x128xf32>
    %5 = arith.mulf %3, %4 : vector<8x128xf32>
    %6 = tpu.iota {dimensions = array<i32: 0>} : vector<8x128xi32>
    %c8_i32 = arith.constant 8 : i32
    %7 = arith.muli %arg0, %c8_i32 : i32
    %c1_i32 = arith.constant 1 : i32
    %8 = arith.subi %c1_i32, %7 : i32
    %9 = vector.broadcast %8 : i32 to vector<8x128xi32>
    %10 = arith.cmpi slt, %6, %9 : vector<8x128xi32>
    %cst = arith.constant 0.000000e+00 : f32
    %11 = vector.broadcast %cst : f32 to vector<8x128xf32>
    %12 = arith.select %10, %5, %11 : vector<8x128xi1>, vector<8x128xf32>
    %13 = vector.shape_cast %12 : vector<8x128xf32> to vector<1x8x128xf32>
    %cst_5 = arith.constant dense<0.000000e+00> : vector<8x128xf32>
    %14 = vector.multi_reduction <add>, %13, %cst_5 [0] : vector<1x8x128xf32> to vector<8x128xf32>
    %c0_6 = arith.constant 0 : index
    %c0_7 = arith.constant 0 : index
    %15 = vector.load %arg4[%c0_6, %c0_7] : memref<8x128xf32, #tpu.memory_space<vmem>>, vector<8x128xf32>
    tpu.vector_store %arg4[%c0_6, %c0_7], %14 {strides = array<i32>} : memref<8x128xf32, #tpu.memory_space<vmem>>, vector<8x128xf32>,
    return
  }
  func.func @transform_0(%arg0: i32) -> (i32, i32) {
    %c0_i32 = arith.constant 0 : i32
    %c0_i32_0 = arith.constant 0 : i32
    return %arg0, %c0_i32 : i32, i32
  }
  func.func @transform_1(%arg0: i32) -> (i32, i32) {
    %c0_i32 = arith.constant 0 : i32
    %c0_i32_0 = arith.constant 0 : i32
    return %arg0, %c0_i32 : i32, i32
  }
  func.func @transform_2(%arg0: i32) -> (i32, i32) {
    %c0_i32 = arith.constant 0 : i32
    %c0_i32_0 = arith.constant 0 : i32
    return %arg0, %c0_i32 : i32, i32
  }
  func.func @transform_3(%arg0: i32) -> (i32, i32) {
    %c0_i32 = arith.constant 0 : i32
    %c0_i32_0 = arith.constant 0 : i32
    return %arg0, %c0_i32 : i32, i32
  }
}

</mosaic_0001>

<bundles_post_ra>
// kernel: tpu_custom_call.1
= control target key start
LH: loop header
LB: loop body
LE: loop exit
PB: predicated region body
PF: predicated region fallthrough
CT: control target
= control target key end

     0   :  { %8 = vsyncpa [#allocation3], 0  ;;  %s251_s0 = inlined_call_operand.hbm [shape: f32[8,128], index: 0, kind: input, shape index: {}]   ;;  %s252_s1 = inlined_call_operand.hbm [shape: f32[8,128], index: 1, kind: input, shape index: {}]   ;;  %s253_s2 = inlined_call_operand.hbm [shape: f32[8,128], index: 2, kind: input, shape index: {}]   ;;  %s254_s3 = inlined_call_operand.hbm [shape: f32[8,128], index: 3, kind: output, shape index: {}]  }
   0x1   :  { %9 = vsyncpa [#allocation6], 0 }
   0x2   :  { %10 = vsyncpa [#allocation4], 0  ;;  %s179_s12 = smov [#allocation5]   ;;  %s180_s14 = smov [#allocation2]  }
   0x3   :  { %s27_s13 = sshll.u32 %s179_s12, 4  ;;  %s17_s15 = sshll.u32 %s180_s14, 4  ;;  %s28_s13 = int_to_ptr.vmem [resolvable:$true] %s27_s13  ;;  %s18_s15 = int_to_ptr.vmem [resolvable:$true] %s17_s15 }
   0x4   :  { %s85_s18 = scalar_lea.hbm %s252_s1, 128 }
   0x5   :  { %p86_p0 = scmp.ne.s32.totalorder %s252_s1, %s85_s18  ;;  %p89_p1 = scmp.lt.u32.totalorder %s85_s18, %s252_s1 }
   0x7   :  { %p91_p2 = pnand %p89_p1, %p86_p0 }
   0x9   :  { %94 = shalt.err (!%p91_p2)
}
   0xa   :  { %s95_s23 = scalar_lea.vmem %s28_s13, 128  ;;  %p100_p4 = scmp.lt.s32.totalorder %s28_s13, %s28_s13 }
   0xb   :  { %p96_p3 = scmp.ne.s32.totalorder %s28_s13, %s95_s23  ;;  %p101_p5 = scmp.lt.s32.totalorder %s95_s23, %s95_s23 }
   0xd   :  { %p102_p6 = por %p101_p5, %p100_p4 }
   0xf   :  { %p103_p7 = pnand %p102_p6, %p96_p3 }
  0x11   :  { %106 = shalt.err (!%p103_p7)
}
  0x12   :  { %30 = dma.hbm_to_vmem [thread:$0]  %s252_s1, 128, %s28_s13, [#allocation6]  }
  0x13   :  { %s107_s28 = scalar_lea.hbm %s251_s0, 128 }
  0x14   :  { %p108_p8 = scmp.ne.s32.totalorder %s251_s0, %s107_s28  ;;  %p111_p9 = scmp.lt.u32.totalorder %s107_s28, %s251_s0 }
  0x16   :  { %p113_p10 = pnand %p111_p9, %p108_p8 }
  0x18   :  { %116 = shalt.err (!%p113_p10)
}
  0x19   :  { %s117_s6 = scalar_lea.vmem %s18_s15, 128  ;;  %p122_p12 = scmp.lt.s32.totalorder %s18_s15, %s18_s15 }
  0x1a   :  { %p118_p11 = scmp.ne.s32.totalorder %s18_s15, %s117_s6  ;;  %p123_p13 = scmp.lt.s32.totalorder %s117_s6, %s117_s6 }
  0x1c   :  { %p124_p0 = por %p123_p13, %p122_p12 }
  0x1e   :  { %p125_p1 = pnand %p124_p0, %p118_p11 }
  0x20   :  { %128 = shalt.err (!%p125_p1)
}
  0x21   :  { %20 = dma.hbm_to_vmem [thread:$0]  %s251_s0, 128, %s18_s15, [#allocation3]  }
  0x22   :  { %s181_s8 = smov [#allocation7]   ;;  %s129_s12 = scalar_lea.hbm %s253_s2, 128 }
  0x23   :  { %s37_s9 = sshll.u32 %s181_s8, 4  ;;  %p130_p2 = scmp.ne.s32.totalorder %s253_s2, %s129_s12  ;;  %s38_s9 = int_to_ptr.vmem [resolvable:$true] %s37_s9 }
  0x24   :  { %p133_p3 = scmp.lt.u32.totalorder %s129_s12, %s253_s2 }
  0x26   :  { %p135_p4 = pnand %p133_p3, %p130_p2 }
  0x28   :  { %138 = shalt.err (!%p135_p4)
}
  0x29   :  { %s139_s18 = scalar_lea.vmem %s38_s9, 128  ;;  %p144_p6 = scmp.lt.s32.totalorder %s38_s9, %s38_s9 }
  0x2a   :  { %p140_p5 = scmp.ne.s32.totalorder %s38_s9, %s139_s18  ;;  %p145_p7 = scmp.lt.s32.totalorder %s139_s18, %s139_s18 }
  0x2c   :  { %p146_p8 = por %p145_p7, %p144_p6 }
  0x2e   :  { %p147_p9 = pnand %p146_p8, %p140_p5 }
  0x30   :  { %150 = shalt.err (!%p147_p9)
}
  0x31   :  { %40 = dma.hbm_to_vmem [thread:$0]  %s253_s2, 128, %s38_s9, [#allocation6]  }
  0x32   :  { %173 = dma.done.wait [#allocation3], 128  }
  0x33   :  { %174 = vsyncadd [#allocation3], 4294967168 }
  0x34   :  { %175 = dma.done.wait [#allocation6], 256  }
  0x35   :  { %176 = vsyncadd [#allocation6], 4294967040  ;;  %v56_v0 = vlaneseq  ;;  %v50_v1 = vld [vmem:[#allocation2] sm:$0xff]  ;;  %v51_v2 = vld [vmem:[#allocation5] sm:$0xff]  ;;  %s182_s19 = smov [#allocation8]  }
  0x36   :  { %v52_v4 = vsub.f32 %v50_v1, %v51_v2  ;;  %v54_v5 = vld [vmem:[#allocation7] sm:$0xff]  ;;  %s71_s20 = sshll.u32 %s182_s19, 4  ;;  %s72_s20 = int_to_ptr.vmem [resolvable:$true] %s71_s20 }
  0x37   :  { %v57_v3 = vshrl.u32 %v56_v0, 7  ;;  %s151_s21 = scalar_lea.vmem %s72_s20, 128  ;;  %p156_p11 = scmp.lt.s32.totalorder %s72_s20, %s72_s20 }
  0x38   :  { %v53_v6 = vmul.f32 %v52_v4, %v52_v4  ;;  %p152_p10 = scmp.ne.s32.totalorder %s72_s20, %s151_s21  ;;  %p157_p12 = scmp.lt.s32.totalorder %s151_s21, %s151_s21 }
  0x39   :  { %vm61_vm0 = vcmp.lt.s32.totalorder %v57_v3, 1 }
  0x3a   :  { %v55_v7 = vmul.f32 %v54_v5, %v53_v6  ;;  %p158_p13 = por %p157_p12, %p156_p11 }
  0x3c   :  { %v62_v8 = vsel %vm61_vm0, %v55_v7, 0.0  ;;  %p159_p0 = pnand %p158_p13, %p152_p10 }
  0x3d   :  { %64 = vst [vmem:[#allocation8] sm:$0xff] %v62_v8 }
  0x3e   :  { %162 = shalt.err (!%p159_p0)
}
  0x3f   :  { %s163_s23 = scalar_lea.hbm %s254_s3, 128 }
  0x40   :  { %p164_p1 = scmp.ne.s32.totalorder %s254_s3, %s163_s23  ;;  %p167_p2 = scmp.lt.u32.totalorder %s163_s23, %s254_s3 }
  0x42   :  { %p169_p3 = pnand %p167_p2, %p164_p1 }
  0x44   :  { %172 = shalt.err (!%p169_p3)
}
  0x45   :  { %74 = dma.vmem_to_hbm [thread:$0]  %s72_s20, 128, %s254_s3, [#allocation4]  }
  0x46   :  { %177 = dma.done.wait [#allocation4], 128  }
  0x47   :  { %178 = vsyncadd [#allocation4], 4294967168 }
  0x48   :  { %78 = vsyncpa [#allocation3], 1 }
  0x49   :  { %79 = vsyncpa [#allocation6], 1 }
  0x4a   :  { %80 = vsyncpa [#allocation4], 1 }

</bundles_post_ra>
